<compile_context>
chip_gen: v6e
topology: v6e:2x2x1
jax: 0.10.0
libtpu: 0.0.40
codegen_flags: <defaults>
</compile_context>

<pallas_src>
import functools

import jax
import jax.numpy as jnp
from jax import lax
from jax.experimental import pallas as pl
from jax.experimental.pallas import tpu as pltpu


def _gru_kernel(h0_ref, gi_ref, whh_ref, bhn_ref, out_ref, hn_ref,
                *, hidden, chunk, seq_len, s_pad, unroll):
    """One (batch-tile, seq-chunk) grid step of the GRU recurrence.

    hn_ref is revisited across the seq-chunk axis and doubles as the carried hidden
    state (accumulator pattern): initialized from h0 at chunk 0; its final value is h_n.
    """
    H = hidden
    bt = h0_ref.shape[0]
    c = pl.program_id(1)

    @pl.when(c == 0)
    def _():
        hn_ref[...] = h0_ref[...]                         # init carry for this batch tile

    # loop-invariant loads / broadcasts hoisted off the serial critical path
    whh = whh_ref[...]                                    # (H, 3H) fused r|z|n
    bhn = jnp.broadcast_to(bhn_ref[...], (bt, H))         # hoisted broadcast

    needs_guard = (s_pad != seq_len)                      # trace-time constant

    def step(t, h):
        gi = gi_ref[t]                                    # (bt, 3H) lane-dense load
        # ONE fused hidden matmul per step — single MXU push on the critical path.
        gh = jnp.dot(h, whh, preferred_element_type=jnp.float32)
        # one sigmoid over the r|z halves together, then static lane slices
        rz = jax.nn.sigmoid(gi[:, :2 * H] + gh[:, :2 * H])
        r = rz[:, :H]
        z = rz[:, H:]
        n = jnp.tanh(gi[:, 2 * H:] + r * (gh[:, 2 * H:] + bhn))
        h_new = (1.0 - z) * n + z * h
        if needs_guard:                                   # mask padded trailing steps
            h_new = jnp.where(c * chunk + t < seq_len, h_new, h)
        out_ref[t] = h_new                                # single per-step store
        return h_new

    hn_ref[...] = lax.fori_loop(0, chunk, step, hn_ref[...], unroll=unroll)


def gru_forward(x, h0, w_ih, w_hh, b_ih, b_hh, *, seq_chunk=None):
    """
    x   : (batch, seq, input_size)   -- batch_first, like the PyTorch module
    h0  : (1, batch, hidden)
    w_ih: (3*hidden, input_size)     -- PyTorch weight_ih_l0 (gate order r, z, n)
    w_hh: (3*hidden, hidden)         -- PyTorch weight_hh_l0
    b_ih: (3*hidden,), b_hh: (3*hidden,)
    returns (output (batch, seq, hidden), h_n (1, batch, hidden))
    """
    B, S, IN = x.shape
    H = w_hh.shape[1]
    f32 = jnp.float32

    x = x.astype(f32)
    h0 = h0.astype(f32)
    w_ih = w_ih.astype(f32)
    w_hh = w_hh.astype(f32)
    b_ih = b_ih.astype(f32)
    b_hh = b_hh.astype(f32)

    Bp = ((B + 7) // 8) * 8                               # pad batch to sublane width
    # Split >=16-row batches into two tiles so the "parallel" axis can use both
    # TensorCores on v7x; a single tile keeps the whole batch in one matmul otherwise.
    bt = Bp // 2 if (Bp >= 16 and Bp % 16 == 0) else Bp
    nb = Bp // bt

    if seq_chunk is None:
        seq_chunk = min(S, 128)                           # per-chunk gi: chunk*bt*3H*4 B
    n_chunks = pl.cdiv(S, seq_chunk)
    Sp = n_chunks * seq_chunk                             # padded sequence length

    # Fused, pre-transposed weights (gate order r|z|n along the lane axis).
    wi_t = w_ih.T                                         # (IN, 3H)
    whh_t = w_hh.T                                        # (H, 3H)
    b_i = jnp.concatenate([b_ih[:2 * H] + b_hh[:2 * H],   # r/z biases folded
                           b_ih[2 * H:]])                 # b_in
    b_hn = b_hh[2 * H:].reshape(1, H)                     # stays inside r * ( . )

    # Time-major, batch/seq-padded input projection — ONE XLA matmul for all steps.
    x_tm = jnp.transpose(x, (1, 0, 2))                    # (S, B, IN)
    x_tm = jnp.pad(x_tm, ((0, Sp - S), (0, Bp - B), (0, 0)))
    gi = (x_tm.reshape(Sp * Bp, IN) @ wi_t + b_i).reshape(Sp, Bp, 3 * H)

    h0_p = jnp.pad(h0[0], ((0, Bp - B), (0, 0)))          # (Bp, H)

    kernel = functools.partial(
        _gru_kernel, hidden=H, chunk=seq_chunk, seq_len=S, s_pad=Sp,
        unroll=min(seq_chunk, 8))

    out_pad, hn_pad = pl.pallas_call(
        kernel,
        out_shape=(
            jax.ShapeDtypeStruct((Sp, Bp, H), f32),       # time-major output slab
            jax.ShapeDtypeStruct((Bp, H), f32),           # final hidden
        ),
        grid_spec=pltpu.PrefetchScalarGridSpec(
            num_scalar_prefetch=0,
            grid=(nb, n_chunks),                          # (batch tiles, seq chunks)
            in_specs=[
                pl.BlockSpec((bt, H), lambda b, c: (b, 0)),                   # h0
                pl.BlockSpec((seq_chunk, bt, 3 * H), lambda b, c: (c, b, 0)), # gi chunk
                pl.BlockSpec((H, 3 * H), lambda b, c: (0, 0)),                # W_h fused
                pl.BlockSpec((1, H), lambda b, c: (0, 0)),                    # b_hn
            ],
            out_specs=[
                pl.BlockSpec((seq_chunk, bt, H), lambda b, c: (c, b, 0)),     # out chunk
                pl.BlockSpec((bt, H), lambda b, c: (b, 0)),                   # h_n / carry
            ],
        ),
        compiler_params=pltpu.CompilerParams(
            dimension_semantics=("parallel", "arbitrary"),
        ),
    )(h0_p, gi, whh_t, b_hn)

    output = jnp.transpose(out_pad[:S, :B, :], (1, 0, 2))  # (B, S, H)
    return output, hn_pad[:B][None, :, :]                  # (1, B, H)


def gru_reference(x, h0, w_ih, w_hh, b_ih, b_hh):
    """Pure-JAX reference matching torch.nn.GRU (batch_first)."""
    H = w_hh.shape[1]

    def step(h, x_t):
        gi = x_t @ w_ih.T + b_ih
        gh = h @ w_hh.T + b_hh
        r = jax.nn.sigmoid(gi[:, :H] + gh[:, :H])
        z = jax.nn.sigmoid(gi[:, H:2 * H] + gh[:, H:2 * H])
        n = jnp.tanh(gi[:, 2 * H:] + r * gh[:, 2 * H:])
        h_new = (1.0 - z) * n + z * h
        return h_new, h_new

    x_tm = jnp.transpose(x, (1, 0, 2))
    h_last, outs = lax.scan(step, h0[0], x_tm)
    return jnp.transpose(outs, (1, 0, 2)), h_last[None]


if __name__ == "__main__":
    input_size = 1
    hidden_size = 32
    batch = 2
    seq = 8

    key = jax.random.PRNGKey(0)
    k_x, k_wih, k_whh, k_bih, k_bhh = jax.random.split(key, 5)

    # Deterministic "torch-like" init: U(-1/sqrt(H), 1/sqrt(H))
    bound = 1.0 / jnp.sqrt(jnp.float32(hidden_size))
    w_ih = jax.random.uniform(k_wih, (3 * hidden_size, input_size),
                              jnp.float32, -bound, bound)
    w_hh = jax.random.uniform(k_whh, (3 * hidden_size, hidden_size),
                              jnp.float32, -bound, bound)
    b_ih = jax.random.uniform(k_bih, (3 * hidden_size,), jnp.float32, -bound, bound)
    b_hh = jax.random.uniform(k_bhh, (3 * hidden_size,), jnp.float32, -bound, bound)

    x = jax.random.normal(k_x, (batch, seq, input_size), jnp.float32)
    h0 = jnp.zeros((1, batch, hidden_size), jnp.float32)   # EncoderRNN.initHidden

    out, h_n = gru_forward(x, h0, w_ih, w_hh, b_ih, b_hh)
    out = jax.block_until_ready(out)
    h_n = jax.block_until_ready(h_n)

    ref_out, ref_hn = gru_reference(x, h0, w_ih, w_hh, b_ih, b_hh)

    assert out.shape == (batch, seq, hidden_size)
    assert h_n.shape == (1, batch, hidden_size)
    assert jnp.allclose(out, ref_out, atol=1e-5, rtol=1e-5)
    assert jnp.allclose(h_n, ref_hn, atol=1e-5, rtol=1e-5)

    print("KERNEL_OK")
</pallas_src>

<mosaic_0001>
module attributes {stable_mosaic.version = 11 : i64} {
  func.func @_gru_kernel(%arg0: i32, %arg1: i32, %arg2: memref<8x32xf32, #tpu.memory_space<vmem>>, %arg3: memref<8x8x96xf32, #tpu.memory_space<vmem>>, %arg4: memref<32x96xf32, #tpu.memory_space<vmem>>, %arg5: memref<1x32xf32, #tpu.memory_space<vmem>>, %arg6: memref<8x8x32xf32, #tpu.memory_space<vmem>>, %arg7: memref<8x32xf32, #tpu.memory_space<vmem>>) attributes {dimension_semantics = [#tpu.dimension_semantics<parallel>, #tpu.dimension_semantics<arbitrary>], iteration_bounds = array<i64: 1, 1>, scalar_prefetch = 0 : i64, scratch_operands = 0 : i64, tpu.core_type = #tpu.core_type<tc>, window_params = [{transform_indices = @transform_0, window_bounds = array<i64: 8, 32>}, {transform_indices = @transform_1, window_bounds = array<i64: 8, 8, 96>}, {pipeline_mode = #tpu.pipeline_mode<synchronous>, transform_indices = @transform_2, window_bounds = array<i64: 32, 96>}, {pipeline_mode = #tpu.pipeline_mode<synchronous>, transform_indices = @transform_3, window_bounds = array<i64: 1, 32>}, {transform_indices = @transform_4, window_bounds = array<i64: 8, 8, 32>}, {transform_indices = @transform_5, window_bounds = array<i64: 8, 32>}]} {
    %c0_i32 = arith.constant 0 : i32
    %0 = arith.cmpi eq, %arg1, %c0_i32 : i32
    %1 = arith.extui %0 : i1 to i32
    %c0_i32_0 = arith.constant 0 : i32
    %2 = arith.cmpi ne, %1, %c0_i32_0 : i32
    scf.if %2 {
      %c0_64 = arith.constant 0 : index
      %c0_65 = arith.constant 0 : index
      %241 = vector.load %arg2[%c0_64, %c0_65] : memref<8x32xf32, #tpu.memory_space<vmem>>, vector<8x32xf32>
      %c0_66 = arith.constant 0 : index
      %c0_67 = arith.constant 0 : index
      %242 = vector.load %arg7[%c0_66, %c0_67] : memref<8x32xf32, #tpu.memory_space<vmem>>, vector<8x32xf32>
      tpu.vector_store %arg7[%c0_66, %c0_67], %241 {strides = array<i32>} : memref<8x32xf32, #tpu.memory_space<vmem>>, vector<8x32xf32>,
    } else {
    }
    %c0 = arith.constant 0 : index
    %c0_1 = arith.constant 0 : index
    %3 = vector.load %arg4[%c0, %c0_1] : memref<32x96xf32, #tpu.memory_space<vmem>>, vector<32x96xf32>
    %c0_2 = arith.constant 0 : index
    %c0_3 = arith.constant 0 : index
    %4 = vector.load %arg5[%c0_2, %c0_3] : memref<1x32xf32, #tpu.memory_space<vmem>>, vector<1x32xf32>
    %5 = vector.shape_cast %4 : vector<1x32xf32> to vector<1x32xf32>
    %6 = vector.broadcast %5 : vector<1x32xf32> to vector<8x32xf32>
    %c0_4 = arith.constant 0 : index
    %c0_5 = arith.constant 0 : index
    %7 = vector.load %arg7[%c0_4, %c0_5] : memref<8x32xf32, #tpu.memory_space<vmem>>, vector<8x32xf32>
    %c0_i32_6 = arith.constant 0 : i32
    %8 = arith.index_cast %c0_i32_6 : i32 to index
    %c0_7 = arith.constant 0 : index
    %c0_8 = arith.constant 0 : index
    %9 = vector.load %arg3[%8, %c0_7, %c0_8] : memref<8x8x96xf32, #tpu.memory_space<vmem>>, vector<1x8x96xf32>
    %10 = vector.shape_cast %9 : vector<1x8x96xf32> to vector<8x96xf32>
    %cst = arith.constant dense<0.000000e+00> : vector<8x96xf32>
    %11 = tpu.matmul %7, %3, %cst {dimension_numbers = #tpu.dot_dimension_numbers<[1], [0], [0], [1], [0, 0, 1, 1], [], []>} : vector<8x32xf32>, vector<32x96xf32>, vector<8x96xf32> -> vector<8x96xf32>
    %12 = vector.extract_strided_slice %10 {offsets = [0, 0], sizes = [8, 64], strides = [1, 1]} : vector<8x96xf32> to vector<8x64xf32>
    %13 = vector.extract_strided_slice %11 {offsets = [0, 0], sizes = [8, 64], strides = [1, 1]} : vector<8x96xf32> to vector<8x64xf32>
    %14 = arith.addf %12, %13 : vector<8x64xf32>
    %15 = arith.negf %14 : vector<8x64xf32>
    %16 = math.exp %15 : vector<8x64xf32>
    %cst_9 = arith.constant 1.000000e+00 : f32
    %17 = vector.broadcast %cst_9 : f32 to vector<8x64xf32>
    %18 = arith.addf %17, %16 : vector<8x64xf32>
    %19 = arith.divf %17, %18 : vector<8x64xf32>
    %20 = vector.extract_strided_slice %19 {offsets = [0, 0], sizes = [8, 32], strides = [1, 1]} : vector<8x64xf32> to vector<8x32xf32>
    %21 = vector.extract_strided_slice %19 {offsets = [0, 32], sizes = [8, 32], strides = [1, 1]} : vector<8x64xf32> to vector<8x32xf32>
    %22 = vector.extract_strided_slice %10 {offsets = [0, 64], sizes = [8, 32], strides = [1, 1]} : vector<8x96xf32> to vector<8x32xf32>
    %23 = vector.extract_strided_slice %11 {offsets = [0, 64], sizes = [8, 32], strides = [1, 1]} : vector<8x96xf32> to vector<8x32xf32>
    %24 = arith.addf %23, %6 : vector<8x32xf32>
    %25 = arith.mulf %20, %24 : vector<8x32xf32>
    %26 = arith.addf %22, %25 : vector<8x32xf32>
    %27 = math.tanh %26 : vector<8x32xf32>
    %cst_10 = arith.constant 1.000000e+00 : f32
    %28 = vector.broadcast %cst_10 : f32 to vector<8x32xf32>
    %29 = arith.subf %28, %21 : vector<8x32xf32>
    %30 = arith.mulf %29, %27 : vector<8x32xf32>
    %31 = arith.mulf %21, %7 : vector<8x32xf32>
    %32 = arith.addf %30, %31 : vector<8x32xf32>
    %33 = arith.index_cast %c0_i32_6 : i32 to index
    %c0_11 = arith.constant 0 : index
    %c0_12 = arith.constant 0 : index
    %34 = vector.load %arg6[%33, %c0_11, %c0_12] : memref<8x8x32xf32, #tpu.memory_space<vmem>>, vector<1x8x32xf32>
    %35 = vector.shape_cast %34 : vector<1x8x32xf32> to vector<8x32xf32>
    %36 = vector.shape_cast %32 : vector<8x32xf32> to vector<1x8x32xf32>
    tpu.vector_store %arg6[%33, %c0_11, %c0_12], %36 {strides = array<i32>} : memref<8x8x32xf32, #tpu.memory_space<vmem>>, vector<1x8x32xf32>,
    %c1_i32 = arith.constant 1 : i32
    %37 = arith.index_cast %c1_i32 : i32 to index
    %c0_13 = arith.constant 0 : index
    %c0_14 = arith.constant 0 : index
    %38 = vector.load %arg3[%37, %c0_13, %c0_14] : memref<8x8x96xf32, #tpu.memory_space<vmem>>, vector<1x8x96xf32>
    %39 = vector.shape_cast %38 : vector<1x8x96xf32> to vector<8x96xf32>
    %cst_15 = arith.constant dense<0.000000e+00> : vector<8x96xf32>
    %40 = tpu.matmul %32, %3, %cst_15 {dimension_numbers = #tpu.dot_dimension_numbers<[1], [0], [0], [1], [0, 0, 1, 1], [], []>} : vector<8x32xf32>, vector<32x96xf32>, vector<8x96xf32> -> vector<8x96xf32>
    %41 = vector.extract_strided_slice %39 {offsets = [0, 0], sizes = [8, 64], strides = [1, 1]} : vector<8x96xf32> to vector<8x64xf32>
    %42 = vector.extract_strided_slice %40 {offsets = [0, 0], sizes = [8, 64], strides = [1, 1]} : vector<8x96xf32> to vector<8x64xf32>
    %43 = arith.addf %41, %42 : vector<8x64xf32>
    %44 = arith.negf %43 : vector<8x64xf32>
    %45 = math.exp %44 : vector<8x64xf32>
    %cst_16 = arith.constant 1.000000e+00 : f32
    %46 = vector.broadcast %cst_16 : f32 to vector<8x64xf32>
    %47 = arith.addf %46, %45 : vector<8x64xf32>
    %48 = arith.divf %46, %47 : vector<8x64xf32>
    %49 = vector.extract_strided_slice %48 {offsets = [0, 0], sizes = [8, 32], strides = [1, 1]} : vector<8x64xf32> to vector<8x32xf32>
    %50 = vector.extract_strided_slice %48 {offsets = [0, 32], sizes = [8, 32], strides = [1, 1]} : vector<8x64xf32> to vector<8x32xf32>
    %51 = vector.extract_strided_slice %39 {offsets = [0, 64], sizes = [8, 32], strides = [1, 1]} : vector<8x96xf32> to vector<8x32xf32>
    %52 = vector.extract_strided_slice %40 {offsets = [0, 64], sizes = [8, 32], strides = [1, 1]} : vector<8x96xf32> to vector<8x32xf32>
    %53 = arith.addf %52, %6 : vector<8x32xf32>
    %54 = arith.mulf %49, %53 : vector<8x32xf32>
    %55 = arith.addf %51, %54 : vector<8x32xf32>
    %56 = math.tanh %55 : vector<8x32xf32>
    %cst_17 = arith.constant 1.000000e+00 : f32
    %57 = vector.broadcast %cst_17 : f32 to vector<8x32xf32>
    %58 = arith.subf %57, %50 : vector<8x32xf32>
    %59 = arith.mulf %58, %56 : vector<8x32xf32>
    %60 = arith.mulf %50, %32 : vector<8x32xf32>
    %61 = arith.addf %59, %60 : vector<8x32xf32>
    %62 = arith.index_cast %c1_i32 : i32 to index
    %c0_18 = arith.constant 0 : index
    %c0_19 = arith.constant 0 : index
    %63 = vector.load %arg6[%62, %c0_18, %c0_19] : memref<8x8x32xf32, #tpu.memory_space<vmem>>, vector<1x8x32xf32>
    %64 = vector.shape_cast %63 : vector<1x8x32xf32> to vector<8x32xf32>
    %65 = vector.shape_cast %61 : vector<8x32xf32> to vector<1x8x32xf32>
    tpu.vector_store %arg6[%62, %c0_18, %c0_19], %65 {strides = array<i32>} : memref<8x8x32xf32, #tpu.memory_space<vmem>>, vector<1x8x32xf32>,
    %c2_i32 = arith.constant 2 : i32
    %66 = arith.index_cast %c2_i32 : i32 to index
    %c0_20 = arith.constant 0 : index
    %c0_21 = arith.constant 0 : index
    %67 = vector.load %arg3[%66, %c0_20, %c0_21] : memref<8x8x96xf32, #tpu.memory_space<vmem>>, vector<1x8x96xf32>
    %68 = vector.shape_cast %67 : vector<1x8x96xf32> to vector<8x96xf32>
    %cst_22 = arith.constant dense<0.000000e+00> : vector<8x96xf32>
    %69 = tpu.matmul %61, %3, %cst_22 {dimension_numbers = #tpu.dot_dimension_numbers<[1], [0], [0], [1], [0, 0, 1, 1], [], []>} : vector<8x32xf32>, vector<32x96xf32>, vector<8x96xf32> -> vector<8x96xf32>
    %70 = vector.extract_strided_slice %68 {offsets = [0, 0], sizes = [8, 64], strides = [1, 1]} : vector<8x96xf32> to vector<8x64xf32>
    %71 = vector.extract_strided_slice %69 {offsets = [0, 0], sizes = [8, 64], strides = [1, 1]} : vector<8x96xf32> to vector<8x64xf32>
    %72 = arith.addf %70, %71 : vector<8x64xf32>
    %73 = arith.negf %72 : vector<8x64xf32>
    %74 = math.exp %73 : vector<8x64xf32>
    %cst_23 = arith.constant 1.000000e+00 : f32
    %75 = vector.broadcast %cst_23 : f32 to vector<8x64xf32>
    %76 = arith.addf %75, %74 : vector<8x64xf32>
    %77 = arith.divf %75, %76 : vector<8x64xf32>
    %78 = vector.extract_strided_slice %77 {offsets = [0, 0], sizes = [8, 32], strides = [1, 1]} : vector<8x64xf32> to vector<8x32xf32>
    %79 = vector.extract_strided_slice %77 {offsets = [0, 32], sizes = [8, 32], strides = [1, 1]} : vector<8x64xf32> to vector<8x32xf32>
    %80 = vector.extract_strided_slice %68 {offsets = [0, 64], sizes = [8, 32], strides = [1, 1]} : vector<8x96xf32> to vector<8x32xf32>
    %81 = vector.extract_strided_slice %69 {offsets = [0, 64], sizes = [8, 32], strides = [1, 1]} : vector<8x96xf32> to vector<8x32xf32>
    %82 = arith.addf %81, %6 : vector<8x32xf32>
    %83 = arith.mulf %78, %82 : vector<8x32xf32>
    %84 = arith.addf %80, %83 : vector<8x32xf32>
    %85 = math.tanh %84 : vector<8x32xf32>
    %cst_24 = arith.constant 1.000000e+00 : f32
    %86 = vector.broadcast %cst_24 : f32 to vector<8x32xf32>
    %87 = arith.subf %86, %79 : vector<8x32xf32>
    %88 = arith.mulf %87, %85 : vector<8x32xf32>
    %89 = arith.mulf %79, %61 : vector<8x32xf32>
    %90 = arith.addf %88, %89 : vector<8x32xf32>
    %91 = arith.index_cast %c2_i32 : i32 to index
    %c0_25 = arith.constant 0 : index
    %c0_26 = arith.constant 0 : index
    %92 = vector.load %arg6[%91, %c0_25, %c0_26] : memref<8x8x32xf32, #tpu.memory_space<vmem>>, vector<1x8x32xf32>
    %93 = vector.shape_cast %92 : vector<1x8x32xf32> to vector<8x32xf32>
    %94 = vector.shape_cast %90 : vector<8x32xf32> to vector<1x8x32xf32>
    tpu.vector_store %arg6[%91, %c0_25, %c0_26], %94 {strides = array<i32>} : memref<8x8x32xf32, #tpu.memory_space<vmem>>, vector<1x8x32xf32>,
    %c3_i32 = arith.constant 3 : i32
    %95 = arith.index_cast %c3_i32 : i32 to index
    %c0_27 = arith.constant 0 : index
    %c0_28 = arith.constant 0 : index
    %96 = vector.load %arg3[%95, %c0_27, %c0_28] : memref<8x8x96xf32, #tpu.memory_space<vmem>>, vector<1x8x96xf32>
    %97 = vector.shape_cast %96 : vector<1x8x96xf32> to vector<8x96xf32>
    %cst_29 = arith.constant dense<0.000000e+00> : vector<8x96xf32>
    %98 = tpu.matmul %90, %3, %cst_29 {dimension_numbers = #tpu.dot_dimension_numbers<[1], [0], [0], [1], [0, 0, 1, 1], [], []>} : vector<8x32xf32>, vector<32x96xf32>, vector<8x96xf32> -> vector<8x96xf32>
    %99 = vector.extract_strided_slice %97 {offsets = [0, 0], sizes = [8, 64], strides = [1, 1]} : vector<8x96xf32> to vector<8x64xf32>
    %100 = vector.extract_strided_slice %98 {offsets = [0, 0], sizes = [8, 64], strides = [1, 1]} : vector<8x96xf32> to vector<8x64xf32>
    %101 = arith.addf %99, %100 : vector<8x64xf32>
    %102 = arith.negf %101 : vector<8x64xf32>
    %103 = math.exp %102 : vector<8x64xf32>
    %cst_30 = arith.constant 1.000000e+00 : f32
    %104 = vector.broadcast %cst_30 : f32 to vector<8x64xf32>
    %105 = arith.addf %104, %103 : vector<8x64xf32>
    %106 = arith.divf %104, %105 : vector<8x64xf32>
    %107 = vector.extract_strided_slice %106 {offsets = [0, 0], sizes = [8, 32], strides = [1, 1]} : vector<8x64xf32> to vector<8x32xf32>
    %108 = vector.extract_strided_slice %106 {offsets = [0, 32], sizes = [8, 32], strides = [1, 1]} : vector<8x64xf32> to vector<8x32xf32>
    %109 = vector.extract_strided_slice %97 {offsets = [0, 64], sizes = [8, 32], strides = [1, 1]} : vector<8x96xf32> to vector<8x32xf32>
    %110 = vector.extract_strided_slice %98 {offsets = [0, 64], sizes = [8, 32], strides = [1, 1]} : vector<8x96xf32> to vector<8x32xf32>
    %111 = arith.addf %110, %6 : vector<8x32xf32>
    %112 = arith.mulf %107, %111 : vector<8x32xf32>
    %113 = arith.addf %109, %112 : vector<8x32xf32>
    %114 = math.tanh %113 : vector<8x32xf32>
    %cst_31 = arith.constant 1.000000e+00 : f32
    %115 = vector.broadcast %cst_31 : f32 to vector<8x32xf32>
    %116 = arith.subf %115, %108 : vector<8x32xf32>
    %117 = arith.mulf %116, %114 : vector<8x32xf32>
    %118 = arith.mulf %108, %90 : vector<8x32xf32>
    %119 = arith.addf %117, %118 : vector<8x32xf32>
    %120 = arith.index_cast %c3_i32 : i32 to index
    %c0_32 = arith.constant 0 : index
    %c0_33 = arith.constant 0 : index
    %121 = vector.load %arg6[%120, %c0_32, %c0_33] : memref<8x8x32xf32, #tpu.memory_space<vmem>>, vector<1x8x32xf32>
    %122 = vector.shape_cast %121 : vector<1x8x32xf32> to vector<8x32xf32>
    %123 = vector.shape_cast %119 : vector<8x32xf32> to vector<1x8x32xf32>
    tpu.vector_store %arg6[%120, %c0_32, %c0_33], %123 {strides = array<i32>} : memref<8x8x32xf32, #tpu.memory_space<vmem>>, vector<1x8x32xf32>,
    %c4_i32 = arith.constant 4 : i32
    %124 = arith.index_cast %c4_i32 : i32 to index
    %c0_34 = arith.constant 0 : index
    %c0_35 = arith.constant 0 : index
    %125 = vector.load %arg3[%124, %c0_34, %c0_35] : memref<8x8x96xf32, #tpu.memory_space<vmem>>, vector<1x8x96xf32>
    %126 = vector.shape_cast %125 : vector<1x8x96xf32> to vector<8x96xf32>
    %cst_36 = arith.constant dense<0.000000e+00> : vector<8x96xf32>
    %127 = tpu.matmul %119, %3, %cst_36 {dimension_numbers = #tpu.dot_dimension_numbers<[1], [0], [0], [1], [0, 0, 1, 1], [], []>} : vector<8x32xf32>, vector<32x96xf32>, vector<8x96xf32> -> vector<8x96xf32>
    %128 = vector.extract_strided_slice %126 {offsets = [0, 0], sizes = [8, 64], strides = [1, 1]} : vector<8x96xf32> to vector<8x64xf32>
    %129 = vector.extract_strided_slice %127 {offsets = [0, 0], sizes = [8, 64], strides = [1, 1]} : vector<8x96xf32> to vector<8x64xf32>
    %130 = arith.addf %128, %129 : vector<8x64xf32>
    %131 = arith.negf %130 : vector<8x64xf32>
    %132 = math.exp %131 : vector<8x64xf32>
    %cst_37 = arith.constant 1.000000e+00 : f32
    %133 = vector.broadcast %cst_37 : f32 to vector<8x64xf32>
    %134 = arith.addf %133, %132 : vector<8x64xf32>
    %135 = arith.divf %133, %134 : vector<8x64xf32>
    %136 = vector.extract_strided_slice %135 {offsets = [0, 0], sizes = [8, 32], strides = [1, 1]} : vector<8x64xf32> to vector<8x32xf32>
    %137 = vector.extract_strided_slice %135 {offsets = [0, 32], sizes = [8, 32], strides = [1, 1]} : vector<8x64xf32> to vector<8x32xf32>
    %138 = vector.extract_strided_slice %126 {offsets = [0, 64], sizes = [8, 32], strides = [1, 1]} : vector<8x96xf32> to vector<8x32xf32>
    %139 = vector.extract_strided_slice %127 {offsets = [0, 64], sizes = [8, 32], strides = [1, 1]} : vector<8x96xf32> to vector<8x32xf32>
    %140 = arith.addf %139, %6 : vector<8x32xf32>
    %141 = arith.mulf %136, %140 : vector<8x32xf32>
    %142 = arith.addf %138, %141 : vector<8x32xf32>
    %143 = math.tanh %142 : vector<8x32xf32>
    %cst_38 = arith.constant 1.000000e+00 : f32
    %144 = vector.broadcast %cst_38 : f32 to vector<8x32xf32>
    %145 = arith.subf %144, %137 : vector<8x32xf32>
    %146 = arith.mulf %145, %143 : vector<8x32xf32>
    %147 = arith.mulf %137, %119 : vector<8x32xf32>
    %148 = arith.addf %146, %147 : vector<8x32xf32>
    %149 = arith.index_cast %c4_i32 : i32 to index
    %c0_39 = arith.constant 0 : index
    %c0_40 = arith.constant 0 : index
    %150 = vector.load %arg6[%149, %c0_39, %c0_40] : memref<8x8x32xf32, #tpu.memory_space<vmem>>, vector<1x8x32xf32>
    %151 = vector.shape_cast %150 : vector<1x8x32xf32> to vector<8x32xf32>
    %152 = vector.shape_cast %148 : vector<8x32xf32> to vector<1x8x32xf32>
    tpu.vector_store %arg6[%149, %c0_39, %c0_40], %152 {strides = array<i32>} : memref<8x8x32xf32, #tpu.memory_space<vmem>>, vector<1x8x32xf32>,
    %c5_i32 = arith.constant 5 : i32
    %153 = arith.index_cast %c5_i32 : i32 to index
    %c0_41 = arith.constant 0 : index
    %c0_42 = arith.constant 0 : index
    %154 = vector.load %arg3[%153, %c0_41, %c0_42] : memref<8x8x96xf32, #tpu.memory_space<vmem>>, vector<1x8x96xf32>
    %155 = vector.shape_cast %154 : vector<1x8x96xf32> to vector<8x96xf32>
    %cst_43 = arith.constant dense<0.000000e+00> : vector<8x96xf32>
    %156 = tpu.matmul %148, %3, %cst_43 {dimension_numbers = #tpu.dot_dimension_numbers<[1], [0], [0], [1], [0, 0, 1, 1], [], []>} : vector<8x32xf32>, vector<32x96xf32>, vector<8x96xf32> -> vector<8x96xf32>
    %157 = vector.extract_strided_slice %155 {offsets = [0, 0], sizes = [8, 64], strides = [1, 1]} : vector<8x96xf32> to vector<8x64xf32>
    %158 = vector.extract_strided_slice %156 {offsets = [0, 0], sizes = [8, 64], strides = [1, 1]} : vector<8x96xf32> to vector<8x64xf32>
    %159 = arith.addf %157, %158 : vector<8x64xf32>
    %160 = arith.negf %159 : vector<8x64xf32>
    %161 = math.exp %160 : vector<8x64xf32>
    %cst_44 = arith.constant 1.000000e+00 : f32
    %162 = vector.broadcast %cst_44 : f32 to vector<8x64xf32>
    %163 = arith.addf %162, %161 : vector<8x64xf32>
    %164 = arith.divf %162, %163 : vector<8x64xf32>
    %165 = vector.extract_strided_slice %164 {offsets = [0, 0], sizes = [8, 32], strides = [1, 1]} : vector<8x64xf32> to vector<8x32xf32>
    %166 = vector.extract_strided_slice %164 {offsets = [0, 32], sizes = [8, 32], strides = [1, 1]} : vector<8x64xf32> to vector<8x32xf32>
    %167 = vector.extract_strided_slice %155 {offsets = [0, 64], sizes = [8, 32], strides = [1, 1]} : vector<8x96xf32> to vector<8x32xf32>
    %168 = vector.extract_strided_slice %156 {offsets = [0, 64], sizes = [8, 32], strides = [1, 1]} : vector<8x96xf32> to vector<8x32xf32>
    %169 = arith.addf %168, %6 : vector<8x32xf32>
    %170 = arith.mulf %165, %169 : vector<8x32xf32>
    %171 = arith.addf %167, %170 : vector<8x32xf32>
    %172 = math.tanh %171 : vector<8x32xf32>
    %cst_45 = arith.constant 1.000000e+00 : f32
    %173 = vector.broadcast %cst_45 : f32 to vector<8x32xf32>
    %174 = arith.subf %173, %166 : vector<8x32xf32>
    %175 = arith.mulf %174, %172 : vector<8x32xf32>
    %176 = arith.mulf %166, %148 : vector<8x32xf32>
    %177 = arith.addf %175, %176 : vector<8x32xf32>
    %178 = arith.index_cast %c5_i32 : i32 to index
    %c0_46 = arith.constant 0 : index
    %c0_47 = arith.constant 0 : index
    %179 = vector.load %arg6[%178, %c0_46, %c0_47] : memref<8x8x32xf32, #tpu.memory_space<vmem>>, vector<1x8x32xf32>
    %180 = vector.shape_cast %179 : vector<1x8x32xf32> to vector<8x32xf32>
    %181 = vector.shape_cast %177 : vector<8x32xf32> to vector<1x8x32xf32>
    tpu.vector_store %arg6[%178, %c0_46, %c0_47], %181 {strides = array<i32>} : memref<8x8x32xf32, #tpu.memory_space<vmem>>, vector<1x8x32xf32>,
    %c6_i32 = arith.constant 6 : i32
    %182 = arith.index_cast %c6_i32 : i32 to index
    %c0_48 = arith.constant 0 : index
    %c0_49 = arith.constant 0 : index
    %183 = vector.load %arg3[%182, %c0_48, %c0_49] : memref<8x8x96xf32, #tpu.memory_space<vmem>>, vector<1x8x96xf32>
    %184 = vector.shape_cast %183 : vector<1x8x96xf32> to vector<8x96xf32>
    %cst_50 = arith.constant dense<0.000000e+00> : vector<8x96xf32>
    %185 = tpu.matmul %177, %3, %cst_50 {dimension_numbers = #tpu.dot_dimension_numbers<[1], [0], [0], [1], [0, 0, 1, 1], [], []>} : vector<8x32xf32>, vector<32x96xf32>, vector<8x96xf32> -> vector<8x96xf32>
    %186 = vector.extract_strided_slice %184 {offsets = [0, 0], sizes = [8, 64], strides = [1, 1]} : vector<8x96xf32> to vector<8x64xf32>
    %187 = vector.extract_strided_slice %185 {offsets = [0, 0], sizes = [8, 64], strides = [1, 1]} : vector<8x96xf32> to vector<8x64xf32>
    %188 = arith.addf %186, %187 : vector<8x64xf32>
    %189 = arith.negf %188 : vector<8x64xf32>
    %190 = math.exp %189 : vector<8x64xf32>
    %cst_51 = arith.constant 1.000000e+00 : f32
    %191 = vector.broadcast %cst_51 : f32 to vector<8x64xf32>
    %192 = arith.addf %191, %190 : vector<8x64xf32>
    %193 = arith.divf %191, %192 : vector<8x64xf32>
    %194 = vector.extract_strided_slice %193 {offsets = [0, 0], sizes = [8, 32], strides = [1, 1]} : vector<8x64xf32> to vector<8x32xf32>
    %195 = vector.extract_strided_slice %193 {offsets = [0, 32], sizes = [8, 32], strides = [1, 1]} : vector<8x64xf32> to vector<8x32xf32>
    %196 = vector.extract_strided_slice %184 {offsets = [0, 64], sizes = [8, 32], strides = [1, 1]} : vector<8x96xf32> to vector<8x32xf32>
    %197 = vector.extract_strided_slice %185 {offsets = [0, 64], sizes = [8, 32], strides = [1, 1]} : vector<8x96xf32> to vector<8x32xf32>
    %198 = arith.addf %197, %6 : vector<8x32xf32>
    %199 = arith.mulf %194, %198 : vector<8x32xf32>
    %200 = arith.addf %196, %199 : vector<8x32xf32>
    %201 = math.tanh %200 : vector<8x32xf32>
    %cst_52 = arith.constant 1.000000e+00 : f32
    %202 = vector.broadcast %cst_52 : f32 to vector<8x32xf32>
    %203 = arith.subf %202, %195 : vector<8x32xf32>
    %204 = arith.mulf %203, %201 : vector<8x32xf32>
    %205 = arith.mulf %195, %177 : vector<8x32xf32>
    %206 = arith.addf %204, %205 : vector<8x32xf32>
    %207 = arith.index_cast %c6_i32 : i32 to index
    %c0_53 = arith.constant 0 : index
    %c0_54 = arith.constant 0 : index
    %208 = vector.load %arg6[%207, %c0_53, %c0_54] : memref<8x8x32xf32, #tpu.memory_space<vmem>>, vector<1x8x32xf32>
    %209 = vector.shape_cast %208 : vector<1x8x32xf32> to vector<8x32xf32>
    %210 = vector.shape_cast %206 : vector<8x32xf32> to vector<1x8x32xf32>
    tpu.vector_store %arg6[%207, %c0_53, %c0_54], %210 {strides = array<i32>} : memref<8x8x32xf32, #tpu.memory_space<vmem>>, vector<1x8x32xf32>,
    %c7_i32 = arith.constant 7 : i32
    %211 = arith.index_cast %c7_i32 : i32 to index
    %c0_55 = arith.constant 0 : index
    %c0_56 = arith.constant 0 : index
    %212 = vector.load %arg3[%211, %c0_55, %c0_56] : memref<8x8x96xf32, #tpu.memory_space<vmem>>, vector<1x8x96xf32>
    %213 = vector.shape_cast %212 : vector<1x8x96xf32> to vector<8x96xf32>
    %cst_57 = arith.constant dense<0.000000e+00> : vector<8x96xf32>
    %214 = tpu.matmul %206, %3, %cst_57 {dimension_numbers = #tpu.dot_dimension_numbers<[1], [0], [0], [1], [0, 0, 1, 1], [], []>} : vector<8x32xf32>, vector<32x96xf32>, vector<8x96xf32> -> vector<8x96xf32>
    %215 = vector.extract_strided_slice %213 {offsets = [0, 0], sizes = [8, 64], strides = [1, 1]} : vector<8x96xf32> to vector<8x64xf32>
    %216 = vector.extract_strided_slice %214 {offsets = [0, 0], sizes = [8, 64], strides = [1, 1]} : vector<8x96xf32> to vector<8x64xf32>
    %217 = arith.addf %215, %216 : vector<8x64xf32>
    %218 = arith.negf %217 : vector<8x64xf32>
    %219 = math.exp %218 : vector<8x64xf32>
    %cst_58 = arith.constant 1.000000e+00 : f32
    %220 = vector.broadcast %cst_58 : f32 to vector<8x64xf32>
    %221 = arith.addf %220, %219 : vector<8x64xf32>
    %222 = arith.divf %220, %221 : vector<8x64xf32>
    %223 = vector.extract_strided_slice %222 {offsets = [0, 0], sizes = [8, 32], strides = [1, 1]} : vector<8x64xf32> to vector<8x32xf32>
    %224 = vector.extract_strided_slice %222 {offsets = [0, 32], sizes = [8, 32], strides = [1, 1]} : vector<8x64xf32> to vector<8x32xf32>
    %225 = vector.extract_strided_slice %213 {offsets = [0, 64], sizes = [8, 32], strides = [1, 1]} : vector<8x96xf32> to vector<8x32xf32>
    %226 = vector.extract_strided_slice %214 {offsets = [0, 64], sizes = [8, 32], strides = [1, 1]} : vector<8x96xf32> to vector<8x32xf32>
    %227 = arith.addf %226, %6 : vector<8x32xf32>
    %228 = arith.mulf %223, %227 : vector<8x32xf32>
    %229 = arith.addf %225, %228 : vector<8x32xf32>
    %230 = math.tanh %229 : vector<8x32xf32>
    %cst_59 = arith.constant 1.000000e+00 : f32
    %231 = vector.broadcast %cst_59 : f32 to vector<8x32xf32>
    %232 = arith.subf %231, %224 : vector<8x32xf32>
    %233 = arith.mulf %232, %230 : vector<8x32xf32>
    %234 = arith.mulf %224, %206 : vector<8x32xf32>
    %235 = arith.addf %233, %234 : vector<8x32xf32>
    %236 = arith.index_cast %c7_i32 : i32 to index
    %c0_60 = arith.constant 0 : index
    %c0_61 = arith.constant 0 : index
    %237 = vector.load %arg6[%236, %c0_60, %c0_61] : memref<8x8x32xf32, #tpu.memory_space<vmem>>, vector<1x8x32xf32>
    %238 = vector.shape_cast %237 : vector<1x8x32xf32> to vector<8x32xf32>
    %239 = vector.shape_cast %235 : vector<8x32xf32> to vector<1x8x32xf32>
    tpu.vector_store %arg6[%236, %c0_60, %c0_61], %239 {strides = array<i32>} : memref<8x8x32xf32, #tpu.memory_space<vmem>>, vector<1x8x32xf32>,
    %c8_i32 = arith.constant 8 : i32
    %c0_62 = arith.constant 0 : index
    %c0_63 = arith.constant 0 : index
    %240 = vector.load %arg7[%c0_62, %c0_63] : memref<8x32xf32, #tpu.memory_space<vmem>>, vector<8x32xf32>
    tpu.vector_store %arg7[%c0_62, %c0_63], %235 {strides = array<i32>} : memref<8x32xf32, #tpu.memory_space<vmem>>, vector<8x32xf32>,
    return
  }
  func.func @transform_0(%arg0: i32, %arg1: i32) -> (i32, i32) {
    %c0_i32 = arith.constant 0 : i32
    %c0_i32_0 = arith.constant 0 : i32
    return %arg0, %c0_i32 : i32, i32
  }
  func.func @transform_1(%arg0: i32, %arg1: i32) -> (i32, i32, i32) {
    %c0_i32 = arith.constant 0 : i32
    %c0_i32_0 = arith.constant 0 : i32
    return %arg1, %arg0, %c0_i32 : i32, i32, i32
  }
  func.func @transform_2(%arg0: i32, %arg1: i32) -> (i32, i32) {
    %c0_i32 = arith.constant 0 : i32
    %c0_i32_0 = arith.constant 0 : i32
    %c0_i32_1 = arith.constant 0 : i32
    return %c0_i32, %c0_i32_0 : i32, i32
  }
  func.func @transform_3(%arg0: i32, %arg1: i32) -> (i32, i32) {
    %c0_i32 = arith.constant 0 : i32
    %c0_i32_0 = arith.constant 0 : i32
    %c0_i32_1 = arith.constant 0 : i32
    return %c0_i32, %c0_i32_0 : i32, i32
  }
  func.func @transform_4(%arg0: i32, %arg1: i32) -> (i32, i32, i32) {
    %c0_i32 = arith.constant 0 : i32
    %c0_i32_0 = arith.constant 0 : i32
    return %arg1, %arg0, %c0_i32 : i32, i32, i32
  }
  func.func @transform_5(%arg0: i32, %arg1: i32) -> (i32, i32) {
    %c0_i32 = arith.constant 0 : i32
    %c0_i32_0 = arith.constant 0 : i32
    return %arg0, %c0_i32 : i32, i32
  }
}

</mosaic_0001>

<bundles_post_ra>
// kernel: tpu_custom_call.1
= control target key start
LH: loop header
LB: loop body
LE: loop exit
PB: predicated region body
PF: predicated region fallthrough
CT: control target
= control target key end

     0   :  { %11 = vsyncpa [#allocation3], 0  ;;  %s1504_s0 = inlined_call_operand.hbm [shape: f32[8,32], index: 0, kind: input, shape index: {}]   ;;  %s1505_s1 = inlined_call_operand.hbm [shape: f32[8,8,96], index: 1, kind: input, shape index: {}]   ;;  %s1506_s2 = inlined_call_operand.hbm [shape: f32[32,96], index: 2, kind: input, shape index: {}]   ;;  %s1507_s3 = inlined_call_operand.vmem [shape: f32[1,32], index: 3, kind: input, shape index: {}]   ;;  %s1508_s4 = inlined_call_operand.hbm [shape: f32[8,8,32], index: 4, kind: output, shape index: {0}]   ;;  %s1509_s5 = inlined_call_operand.hbm [shape: f32[8,32], index: 5, kind: output, shape index: {1}]  }
   0x1   :  { %12 = vsyncpa [#allocation6], 0 }
   0x2   :  { %13 = vsyncpa [#allocation4], 0 }
   0x3   :  { %14 = vsyncpa [#allocation10], 0  ;;  %s1286_s18 = smov [#allocation5]  }
   0x4   :  { %s30_s19 = sshll.u32 %s1286_s18, 4  ;;  %s31_s19 = int_to_ptr.vmem [resolvable:$true] %s30_s19 }
   0x5   :  { %s1186_s20 = scalar_lea.vmem %s31_s19, 1024  ;;  %p1191_p1 = scmp.lt.s32.totalorder %s31_s19, %s31_s19 }
   0x6   :  { %p1187_p0 = scmp.ne.s32.totalorder %s31_s19, %s1186_s20  ;;  %p1192_p2 = scmp.lt.s32.totalorder %s1186_s20, %s1186_s20 }
   0x8   :  { %p1193_p3 = por %p1192_p2, %p1191_p1 }
   0xa   :  { %p1194_p4 = pnand %p1193_p3, %p1187_p0 }
   0xc   :  { %1197 = shalt.err (!%p1194_p4)
}
   0xd   :  { %s1287_s21 = smov 128   ;;  %s1288_s22 = smov 8  }
   0xe   :  { %36 = dma.hbm_to_vmem [thread:$0]  %s1505_s1, 1024, %s31_s19, [#allocation6], %s1287_s21, %s1287_s21, %s1288_s22  }
   0xf   :  { %s1289_s25 = smov [#allocation2]   ;;  %s1290_s27 = smov [#allocation7]  }
  0x10   :  { %s21_s26 = sshll.u32 %s1289_s25, 4  ;;  %s42_s28 = sshll.u32 %s1290_s27, 4  ;;  %s22_s26 = int_to_ptr.vmem [resolvable:$true] %s21_s26  ;;  %s43_s28 = int_to_ptr.vmem [resolvable:$true] %s42_s28 }
  0x11   :  { %s1206_s29 = scalar_lea.vmem %s22_s26, 128  ;;  %p1211_p6 = scmp.lt.s32.totalorder %s22_s26, %s22_s26 }
  0x12   :  { %p1207_p5 = scmp.ne.s32.totalorder %s22_s26, %s1206_s29  ;;  %p1212_p7 = scmp.lt.s32.totalorder %s1206_s29, %s1206_s29 }
  0x14   :  { %p1213_p8 = por %p1212_p7, %p1211_p6 }
  0x16   :  { %p1214_p9 = pnand %p1213_p8, %p1207_p5 }
  0x18   :  { %1217 = shalt.err (!%p1214_p9)
}
  0x19   :  { %24 = dma.hbm_to_vmem [thread:$0]  %s1504_s0, 128, %s22_s26, [#allocation3]  }
  0x1a   :  { %s1226_s7 = scalar_lea.vmem %s43_s28, 512  ;;  %p1231_p11 = scmp.lt.s32.totalorder %s43_s28, %s43_s28 }
  0x1b   :  { %p1227_p10 = scmp.ne.s32.totalorder %s43_s28, %s1226_s7  ;;  %p1232_p12 = scmp.lt.s32.totalorder %s1226_s7, %s1226_s7 }
  0x1d   :  { %p1233_p13 = por %p1232_p12, %p1231_p11 }
  0x1f   :  { %p1234_p0 = pnand %p1233_p13, %p1227_p10 }
  0x21   :  { %1237 = shalt.err (!%p1234_p0)
}
  0x22   :  { %48 = dma.hbm_to_vmem [thread:$0]  %s1506_s2, 512, %s43_s28, [#allocation6], %s1287_s21, %s1287_s21, %s1288_s22  }
  0x23   :  { %1278 = dma.done.wait [#allocation3], 128  }
  0x24   :  { %1279 = vsyncadd [#allocation3], 4294967168 }
  0x25   :  { %1280 = dma.done.wait [#allocation6], 1536  }
  0x26   :  { %1281 = vsyncadd [#allocation6], 4294965760  ;;  %v1291_v0 = vmov 0.0   ;;  %vm1292_vm0 = vmmov 0   ;;  %vm65_vm1 = vcmask 261120   ;;  %v1349_v1 = vld [vmem:[#allocation7 + $0x18] sm:$0xff] }
  0x27   :  { %1030 = vmatprep.subr.mxu0 %v1291_v0  ;;  %1038 = vmatprep.mubr.msk.f32.mxu0 %vm1292_vm0, %v1291_v0  ;;  %v1351_v2 = vld [vmem:[#allocation7 + $0x10] sm:$0xff]  ;;  %v64_v3 = vld [vmem:[#allocation2] sm:$0xff]  ;;  %v1359_v5 = vld [vmem:[#allocation7 + $0x8] sm:$0xff]  ;;  %s1293_s9 = smov 64   ;;  %s1295_s10 = smov 96  }
  0x28   :  { %1041 = vmatprep.subr.mxu1 %v1291_v0  ;;  %1049 = vmatprep.mubr.msk.f32.mxu1 %vm1292_vm0, %v1291_v0  ;;  %v973_v4 = vld [vmem:[%s1507_s3] ss:$0 sm:$0xff]  ;;  %66 = vst.msk [vmem:[#allocation9] sm:$0xff] %vm65_vm1, %v64_v3  ;;  %v1366_v6 = vld [vmem:[#allocation7] sm:$0xff]  ;;  %s1294_s3 = smov 32   ;;  %v192_v33 = vld [vmem:[#allocation5 + $0x8] sm:$0xff] }
  0x29   :  { %1031 = vmatpush3.msra.mxu0 %v1349_v1  ;;  %1042 = vmatpush3.msra.mxu1 %v1349_v1  ;;  %v78_v12 = vld [vmem:[#allocation5] sm:$0xff]  ;;  %v299_v53 = vld [vmem:[#allocation5 + $0x10] sm:$0xff]  ;;  %s1296_s11 = smov [#allocation8]   ;;  %s1297_s13 = smov [#allocation9]  }
  0x2a   :  { %1032 = vmatprep.subr.mxu0 %v1291_v0  ;;  %160 = vrot.lane.b32.xlu0 %v973_v4, %s1293_s9  ;;  %s946_s12 = sshll.u32 %s1296_s11, 4  ;;  %s959_s14 = sshll.u32 %s1297_s13, 4  ;;  %s947_s12 = int_to_ptr.vmem [resolvable:$true] %s946_s12  ;;  %s960_s14 = int_to_ptr.vmem [resolvable:$true] %s959_s14 }
  0x2b   :  { %1033 = vmatpush3.msra.mxu0 %v1351_v2  ;;  %1043 = vmatprep.subr.mxu1 %v1291_v0  ;;  %s1238_s15 = scalar_lea.vmem %s947_s12, 1024  ;;  %p1243_p2 = scmp.lt.s32.totalorder %s947_s12, %s947_s12 }
  0x2c   :  { %1034 = vmatprep.subr.mxu0 %v1291_v0  ;;  %1044 = vmatpush3.msra.mxu1 %v1351_v2  ;;  %p1239_p1 = scmp.ne.s32.totalorder %s947_s12, %s1238_s15  ;;  %p1244_p3 = scmp.lt.s32.totalorder %s1238_s15, %s1238_s15 }
  0x2d   :  { %1035 = vmatpush3.msra.mxu0 %v1359_v5  ;;  %1045 = vmatprep.subr.mxu1 %v1291_v0 }
  0x2e   :  { %1036 = vmatprep.subr.mxu0 %v1291_v0  ;;  %1046 = vmatpush3.msra.mxu1 %v1359_v5  ;;  %p1245_p4 = por %p1244_p3, %p1243_p2 }
  0x2f   :  { %1037 = vmatpush3.msra.mxu0 %v1366_v6  ;;  %1047 = vmatprep.subr.mxu1 %v1291_v0  ;;  %v77_v7 = vld [vmem:[#allocation9] sm:$0xff] }
  0x30   :  { %1048 = vmatpush3.msra.mxu1 %v1366_v6  ;;  %1052 = vmatprep.subr.mxu0 %v1291_v0  ;;  %p1246_p5 = pnand %p1245_p4, %p1239_p1 }
  0x31   :  { %1063 = vmatprep.subr.mxu1 %v1291_v0  ;;  %1039 = vmatmul.mubr.msk.f32.vlgmr.msra.gmra.mxu0 %vm65_vm1, %v77_v7 }
  0x32   :  { %1053 = vmatpush3.msra.mxu0 %v1349_v1  ;;  %1060 = vmatprep.mubr.msk.f32.mxu0 %vm1292_vm0, %v1291_v0 }
  0x33   :  { %1054 = vmatprep.subr.mxu0 %v1291_v0 }
  0x34   :  { %1055 = vmatpush3.msra.mxu0 %v1351_v2 }
  0x35   :  { %1056 = vmatprep.subr.mxu0 %v1291_v0 }
  0x36   :  { %1057 = vmatpush3.msra.mxu0 %v1359_v5 }
  0x37   :  { %1058 = vmatprep.subr.mxu0 %v1291_v0 }
  0x38   :  { %1059 = vmatpush3.msra.mxu0 %v1366_v6 }
  0x39   :  { %1074 = vmatprep.subr.mxu0 %v1291_v0 }
  0x9c   :  { %v1389_v8 = vpop.permute.xlu0 %160 }
  0xf1   :  { %v149_v9 = vpop.f32.mrf.mxu0 }
  0xf2   :  { %v163_v10 = vadd.f32 %v1389_v8, %v149_v9  ;;  %v153_v13 = vadd.f32 %v149_v9, %v78_v12 }
  0xf3   :  { %v1040_v11 = vpop.f32.mrf.mxu0 }
  0xf4   :  { %165 = vrot.lane.b32.xlu0 %v163_v10, %s1293_s9  ;;  %v975_v14 = vmul.f32 -1.442695, %v153_v13 }
  0xf6   :  { %1130 = vpow2.f32 %v975_v14 }
  0xf8   :  { %181 = vrot.lane.b32.xlu0 %v77_v7, %s1294_s3 }
 0x103   :  { %v1131_v15 = vpop.eup %1130 }
 0x104   :  { %v157_v16 = vadd.f32 1.0, %v1131_v15  ;;  %v406_v15 = vld [vmem:[#allocation5 + $0x18] sm:$0xff] }
 0x106   :  { %1132 = vrcp.f32 %v157_v16 }
 0x113   :  { %v1133_v17 = vpop.eup %1132 }
 0x114   :  { %v175_v24 = vsub.f32 1.0, %v1133_v17 }
 0x166   :  { %v166_v18 = vpop.permute.xlu0 %165 }
 0x167   :  { %v168_v19 = vmul.f32 %v1133_v17, %v166_v18 }
 0x169   :  { %170 = vrot.lane.b32.xlu1 %v168_v19, %s1293_s9 }
 0x16a   :  { %v182_v23 = vpop.permute.xlu0 %181 }
 0x16b   :  { %v184_v26 = vmul.f32 %v1133_v17, %v182_v23 }
 0x1db   :  { %v171_v20 = vpop.permute.xlu1 %170 }
 0x1dc   :  { %v173_v21 = vadd.f32 %v171_v20, %v78_v12 }
 0x1de   :  { %1134 = vtanh.f32 %v173_v21 }
 0x1eb   :  { %v1135_v22 = vpop.eup %1134 }
 0x1ec   :  { %177 = vrot.lane.b32.xlu1 %v1135_v22, %s1295_s10 }
 0x25e   :  { %v178_v25 = vpop.permute.xlu1 %177 }
 0x25f   :  { %v180_v27 = vmul.f32 %v178_v25, %v175_v24 }
 0x261   :  { %v185_v28 = vadd.f32 %v184_v26, %v180_v27 }
 0x263   :  { %187 = vrot.lane.b32.xlu1 %v185_v28, %s1295_s10 }
 0x2d5   :  { %v188_v29 = vpop.permute.xlu1 %187 }
 0x2d6   :  { %190 = vst.msk [vmem:[#allocation8] sm:$0xff] %vm65_vm1, %v188_v29  ;;  %1050 = vmatmul.mubr.msk.f32.vlgmr.msra.gmra.mxu1 %vm65_vm1, %v188_v29 }
 0x2d7   :  { %1064 = vmatpush3.msra.mxu1 %v1349_v1  ;;  %1071 = vmatprep.mubr.msk.f32.mxu1 %vm1292_vm0, %v1291_v0 }
 0x2d8   :  { %1065 = vmatprep.subr.mxu1 %v1291_v0 }
 0x2d9   :  { %1066 = vmatpush3.msra.mxu1 %v1351_v2 }
 0x2da   :  { %1067 = vmatprep.subr.mxu1 %v1291_v0 }
 0x2db   :  { %1068 = vmatpush3.msra.mxu1 %v1359_v5 }
 0x2dc   :  { %1069 = vmatprep.subr.mxu1 %v1291_v0 }
 0x2dd   :  { %1070 = vmatpush3.msra.mxu1 %v1366_v6 }
 0x2de   :  { %1085 = vmatprep.subr.mxu1 %v1291_v0 }
 0x396   :  { %v261_v30 = vpop.f32.mrf.mxu1 }
 0x397   :  { %v272_v31 = vadd.f32 %v261_v30, %v1389_v8  ;;  %v265_v34 = vadd.f32 %v261_v30, %v192_v33 }
 0x398   :  { %v1051_v32 = vpop.f32.mrf.mxu1 }
 0x399   :  { %274 = vrot.lane.b32.xlu0 %v272_v31, %s1293_s9  ;;  %v977_v35 = vmul.f32 -1.442695, %v265_v34 }
 0x39b   :  { %1136 = vpow2.f32 %v977_v35  ;;  %v513_v35 = vld [vmem:[#allocation5 + $0x20] sm:$0xff] }
 0x3a8   :  { %v1137_v36 = vpop.eup %1136 }
 0x3a9   :  { %v269_v37 = vadd.f32 1.0, %v1137_v36 }
 0x3ab   :  { %1138 = vrcp.f32 %v269_v37 }
 0x3b8   :  { %v1139_v38 = vpop.eup %1138 }
 0x3b9   :  { %v284_v44 = vsub.f32 1.0, %v1139_v38  ;;  %v290_v46 = vmul.f32 %v1139_v38, %v185_v28 }
 0x40b   :  { %v275_v39 = vpop.permute.xlu0 %274 }
 0x40c   :  { %v277_v40 = vmul.f32 %v1139_v38, %v275_v39 }
 0x40e   :  { %279 = vrot.lane.b32.xlu1 %v277_v40, %s1293_s9 }
 0x480   :  { %v280_v41 = vpop.permute.xlu1 %279 }
 0x481   :  { %v282_v42 = vadd.f32 %v280_v41, %v192_v33 }
 0x483   :  { %1140 = vtanh.f32 %v282_v42 }
 0x490   :  { %v1141_v43 = vpop.eup %1140 }
 0x491   :  { %286 = vrot.lane.b32.xlu0 %v1141_v43, %s1295_s10 }
 0x503   :  { %v287_v45 = vpop.permute.xlu0 %286 }
 0x504   :  { %v289_v47 = vmul.f32 %v287_v45, %v284_v44 }
 0x506   :  { %v291_v48 = vadd.f32 %v290_v46, %v289_v47 }
 0x508   :  { %293 = vrot.lane.b32.xlu1 %v291_v48, %s1295_s10 }
 0x57a   :  { %v294_v49 = vpop.permute.xlu1 %293 }
 0x57b   :  { %297 = vst.msk [vmem:[#allocation8 + $0x8] sm:$0xff] %vm65_vm1, %v294_v49  ;;  %1061 = vmatmul.mubr.msk.f32.vlgmr.msra.gmra.mxu0 %vm65_vm1, %v294_v49 }
 0x57c   :  { %1075 = vmatpush3.msra.mxu0 %v1349_v1  ;;  %1082 = vmatprep.mubr.msk.f32.mxu0 %vm1292_vm0, %v1291_v0 }
 0x57d   :  { %1076 = vmatprep.subr.mxu0 %v1291_v0 }
 0x57e   :  { %1077 = vmatpush3.msra.mxu0 %v1351_v2 }
 0x57f   :  { %1078 = vmatprep.subr.mxu0 %v1291_v0 }
 0x580   :  { %1079 = vmatpush3.msra.mxu0 %v1359_v5 }
 0x581   :  { %1080 = vmatprep.subr.mxu0 %v1291_v0 }
 0x582   :  { %1081 = vmatpush3.msra.mxu0 %v1366_v6 }
 0x583   :  { %1096 = vmatprep.subr.mxu0 %v1291_v0 }
 0x63b   :  { %v368_v50 = vpop.f32.mrf.mxu0 }
 0x63c   :  { %v379_v51 = vadd.f32 %v368_v50, %v1389_v8  ;;  %v372_v54 = vadd.f32 %v368_v50, %v299_v53 }
 0x63d   :  { %v1062_v52 = vpop.f32.mrf.mxu0 }
 0x63e   :  { %381 = vrot.lane.b32.xlu0 %v379_v51, %s1293_s9  ;;  %v979_v55 = vmul.f32 -1.442695, %v372_v54 }
 0x640   :  { %1142 = vpow2.f32 %v979_v55 }
 0x64d   :  { %v1143_v56 = vpop.eup %1142 }
 0x64e   :  { %v376_v57 = vadd.f32 1.0, %v1143_v56 }
 0x650   :  { %1144 = vrcp.f32 %v376_v57 }
 0x65d   :  { %v1145_v58 = vpop.eup %1144 }
 0x65e   :  { %v391_v3 = vsub.f32 1.0, %v1145_v58  ;;  %v397_v7 = vmul.f32 %v1145_v58, %v291_v48 }
 0x6b0   :  { %v382_v59 = vpop.permute.xlu0 %381 }
 0x6b1   :  { %v384_v60 = vmul.f32 %v1145_v58, %v382_v59 }
 0x6b3   :  { %386 = vrot.lane.b32.xlu1 %v384_v60, %s1293_s9 }
 0x725   :  { %v387_v61 = vpop.permute.xlu1 %386 }
 0x726   :  { %v389_v62 = vadd.f32 %v387_v61, %v299_v53 }
 0x728   :  { %1146 = vtanh.f32 %v389_v62 }
 0x735   :  { %v1147_v63 = vpop.eup %1146 }
 0x736   :  { %393 = vrot.lane.b32.xlu0 %v1147_v63, %s1295_s10 }
 0x7a8   :  { %v394_v4 = vpop.permute.xlu0 %393 }
 0x7a9   :  { %v396_v9 = vmul.f32 %v394_v4, %v391_v3 }
 0x7ab   :  { %v398_v10 = vadd.f32 %v397_v7, %v396_v9 }
 0x7ad   :  { %400 = vrot.lane.b32.xlu1 %v398_v10, %s1295_s10 }
 0x81f   :  { %v401_v11 = vpop.permute.xlu1 %400 }
 0x820   :  { %404 = vst.msk [vmem:[#allocation8 + $0x10] sm:$0xff] %vm65_vm1, %v401_v11  ;;  %1072 = vmatmul.mubr.msk.f32.vlgmr.msra.gmra.mxu1 %vm65_vm1, %v401_v11 }
 0x821   :  { %1086 = vmatpush3.msra.mxu1 %v1349_v1  ;;  %1093 = vmatprep.mubr.msk.f32.mxu1 %vm1292_vm0, %v1291_v0 }
 0x822   :  { %1087 = vmatprep.subr.mxu1 %v1291_v0 }
 0x823   :  { %1088 = vmatpush3.msra.mxu1 %v1351_v2 }
 0x824   :  { %1089 = vmatprep.subr.mxu1 %v1291_v0 }
 0x825   :  { %1090 = vmatpush3.msra.mxu1 %v1359_v5 }
 0x826   :  { %1091 = vmatprep.subr.mxu1 %v1291_v0 }
 0x827   :  { %1092 = vmatpush3.msra.mxu1 %v1366_v6 }
 0x828   :  { %1107 = vmatprep.subr.mxu1 %v1291_v0 }
 0x8e0   :  { %v475_v12 = vpop.f32.mrf.mxu1 }
 0x8e1   :  { %v486_v13 = vadd.f32 %v475_v12, %v1389_v8  ;;  %v479_v16 = vadd.f32 %v475_v12, %v406_v15  ;;  %v727_v12 = vld [vmem:[#allocation5 + $0x30] sm:$0xff] }
 0x8e2   :  { %v1073_v14 = vpop.f32.mrf.mxu1 }
 0x8e3   :  { %488 = vrot.lane.b32.xlu0 %v486_v13, %s1293_s9  ;;  %v981_v17 = vmul.f32 -1.442695, %v479_v16 }
 0x8e5   :  { %1148 = vpow2.f32 %v981_v17 }
 0x8f2   :  { %v1149_v18 = vpop.eup %1148 }
 0x8f3   :  { %v483_v19 = vadd.f32 1.0, %v1149_v18 }
 0x8f5   :  { %1150 = vrcp.f32 %v483_v19 }
 0x902   :  { %v1151_v20 = vpop.eup %1150 }
 0x903   :  { %v498_v26 = vsub.f32 1.0, %v1151_v20  ;;  %v504_v28 = vmul.f32 %v1151_v20, %v398_v10 }
 0x955   :  { %v489_v21 = vpop.permute.xlu0 %488 }
 0x956   :  { %v491_v22 = vmul.f32 %v1151_v20, %v489_v21 }
 0x958   :  { %493 = vrot.lane.b32.xlu1 %v491_v22, %s1293_s9 }
 0x9ca   :  { %v494_v23 = vpop.permute.xlu1 %493 }
 0x9cb   :  { %v496_v24 = vadd.f32 %v494_v23, %v406_v15 }
 0x9cd   :  { %1152 = vtanh.f32 %v496_v24 }
 0x9da   :  { %v1153_v25 = vpop.eup %1152 }
 0x9db   :  { %500 = vrot.lane.b32.xlu0 %v1153_v25, %s1295_s10 }
 0xa4d   :  { %v501_v27 = vpop.permute.xlu0 %500 }
 0xa4e   :  { %v503_v29 = vmul.f32 %v501_v27, %v498_v26 }
 0xa50   :  { %v505_v30 = vadd.f32 %v504_v28, %v503_v29 }
 0xa52   :  { %507 = vrot.lane.b32.xlu1 %v505_v30, %s1295_s10 }
 0xac4   :  { %v508_v31 = vpop.permute.xlu1 %507 }
 0xac5   :  { %511 = vst.msk [vmem:[#allocation8 + $0x18] sm:$0xff] %vm65_vm1, %v508_v31  ;;  %1083 = vmatmul.mubr.msk.f32.vlgmr.msra.gmra.mxu0 %vm65_vm1, %v508_v31 }
 0xac6   :  { %1097 = vmatpush3.msra.mxu0 %v1349_v1  ;;  %1104 = vmatprep.mubr.msk.f32.mxu0 %vm1292_vm0, %v1291_v0 }
 0xac7   :  { %1098 = vmatprep.subr.mxu0 %v1291_v0 }
 0xac8   :  { %1099 = vmatpush3.msra.mxu0 %v1351_v2 }
 0xac9   :  { %1100 = vmatprep.subr.mxu0 %v1291_v0 }
 0xaca   :  { %1101 = vmatpush3.msra.mxu0 %v1359_v5 }
 0xacb   :  { %1102 = vmatprep.subr.mxu0 %v1291_v0 }
 0xacc   :  { %1103 = vmatpush3.msra.mxu0 %v1366_v6 }
 0xb85   :  { %v582_v32 = vpop.f32.mrf.mxu0 }
 0xb86   :  { %v593_v33 = vadd.f32 %v582_v32, %v1389_v8  ;;  %v586_v36 = vadd.f32 %v582_v32, %v513_v35  ;;  %v834_v32 = vld [vmem:[#allocation5 + $0x38] sm:$0xff] }
 0xb87   :  { %v1084_v34 = vpop.f32.mrf.mxu0 }
 0xb88   :  { %595 = vrot.lane.b32.xlu0 %v593_v33, %s1293_s9  ;;  %v983_v37 = vmul.f32 -1.442695, %v586_v36 }
 0xb8a   :  { %1154 = vpow2.f32 %v983_v37 }
 0xb97   :  { %v1155_v38 = vpop.eup %1154 }
 0xb98   :  { %v590_v39 = vadd.f32 1.0, %v1155_v38 }
 0xb9a   :  { %1156 = vrcp.f32 %v590_v39 }
 0xba7   :  { %v1157_v40 = vpop.eup %1156 }
 0xba8   :  { %v605_v46 = vsub.f32 1.0, %v1157_v40  ;;  %v611_v48 = vmul.f32 %v1157_v40, %v505_v30 }
 0xbfa   :  { %v596_v41 = vpop.permute.xlu0 %595 }
 0xbfb   :  { %v598_v42 = vmul.f32 %v1157_v40, %v596_v41 }
 0xbfd   :  { %600 = vrot.lane.b32.xlu1 %v598_v42, %s1293_s9 }
 0xc6f   :  { %v601_v43 = vpop.permute.xlu1 %600 }
 0xc70   :  { %v603_v44 = vadd.f32 %v601_v43, %v513_v35 }
 0xc72   :  { %1158 = vtanh.f32 %v603_v44 }
 0xc7f   :  { %v1159_v45 = vpop.eup %1158 }
 0xc80   :  { %607 = vrot.lane.b32.xlu0 %v1159_v45, %s1295_s10 }
 0xcf2   :  { %v608_v47 = vpop.permute.xlu0 %607 }
 0xcf3   :  { %v610_v49 = vmul.f32 %v608_v47, %v605_v46 }
 0xcf5   :  { %v612_v50 = vadd.f32 %v611_v48, %v610_v49 }
 0xcf7   :  { %614 = vrot.lane.b32.xlu1 %v612_v50, %s1295_s10 }
 0xd69   :  { %v615_v51 = vpop.permute.xlu1 %614 }
 0xd6a   :  { %618 = vst.msk [vmem:[#allocation8 + $0x20] sm:$0xff] %vm65_vm1, %v615_v51  ;;  %1094 = vmatmul.mubr.msk.f32.vlgmr.msra.gmra.mxu1 %vm65_vm1, %v615_v51 }
 0xd6b   :  { %1108 = vmatpush3.msra.mxu1 %v1349_v1  ;;  %1115 = vmatprep.mubr.msk.f32.mxu1 %vm1292_vm0, %v1291_v0  ;;  %v620_v1 = vld [vmem:[#allocation5 + $0x28] sm:$0xff] }
 0xd6c   :  { %1109 = vmatprep.subr.mxu1 %v1291_v0 }
 0xd6d   :  { %1110 = vmatpush3.msra.mxu1 %v1351_v2 }
 0xd6e   :  { %1111 = vmatprep.subr.mxu1 %v1291_v0 }
 0xd6f   :  { %1112 = vmatpush3.msra.mxu1 %v1359_v5 }
 0xd70   :  { %1113 = vmatprep.subr.mxu1 %v1291_v0 }
 0xd71   :  { %1114 = vmatpush3.msra.mxu1 %v1366_v6 }
 0xe2a   :  { %v689_v52 = vpop.f32.mrf.mxu1 }
 0xe2b   :  { %v700_v53 = vadd.f32 %v689_v52, %v1389_v8  ;;  %v693_v55 = vadd.f32 %v689_v52, %v620_v1 }
 0xe2c   :  { %v1095_v54 = vpop.f32.mrf.mxu1 }
 0xe2d   :  { %702 = vrot.lane.b32.xlu0 %v700_v53, %s1293_s9  ;;  %v985_v56 = vmul.f32 -1.442695, %v693_v55 }
 0xe2f   :  { %1160 = vpow2.f32 %v985_v56 }
 0xe3c   :  { %v1161_v57 = vpop.eup %1160 }
 0xe3d   :  { %v697_v2 = vadd.f32 1.0, %v1161_v57 }
 0xe3f   :  { %1162 = vrcp.f32 %v697_v2 }
 0xe4c   :  { %v1163_v58 = vpop.eup %1162 }
 0xe4d   :  { %v712_v61 = vsub.f32 1.0, %v1163_v58  ;;  %v718_v63 = vmul.f32 %v1163_v58, %v612_v50 }
 0xe9f   :  { %v703_v59 = vpop.permute.xlu0 %702 }
 0xea0   :  { %v705_v5 = vmul.f32 %v1163_v58, %v703_v59 }
 0xea2   :  { %707 = vrot.lane.b32.xlu1 %v705_v5, %s1293_s9 }
 0xf14   :  { %v708_v0 = vpop.permute.xlu1 %707 }
 0xf15   :  { %v710_v6 = vadd.f32 %v708_v0, %v620_v1 }
 0xf17   :  { %1164 = vtanh.f32 %v710_v6 }
 0xf24   :  { %v1165_v60 = vpop.eup %1164 }
 0xf25   :  { %714 = vrot.lane.b32.xlu0 %v1165_v60, %s1295_s10 }
 0xf97   :  { %v715_v62 = vpop.permute.xlu0 %714 }
 0xf98   :  { %v717_v3 = vmul.f32 %v715_v62, %v712_v61 }
 0xf9a   :  { %v719_v4 = vadd.f32 %v718_v63, %v717_v3 }
 0xf9c   :  { %721 = vrot.lane.b32.xlu1 %v719_v4, %s1295_s10 }
0x100e   :  { %v722_v7 = vpop.permute.xlu1 %721 }
0x100f   :  { %725 = vst.msk [vmem:[#allocation8 + $0x28] sm:$0xff] %vm65_vm1, %v722_v7  ;;  %1105 = vmatmul.mubr.msk.f32.vlgmr.msra.gmra.mxu0 %vm65_vm1, %v722_v7 }
0x10cf   :  { %v796_v9 = vpop.f32.mrf.mxu0 }
0x10d0   :  { %v807_v10 = vadd.f32 %v796_v9, %v1389_v8  ;;  %v800_v13 = vadd.f32 %v796_v9, %v727_v12 }
0x10d1   :  { %v1106_v11 = vpop.f32.mrf.mxu0 }
0x10d2   :  { %809 = vrot.lane.b32.xlu0 %v807_v10, %s1293_s9  ;;  %v987_v14 = vmul.f32 -1.442695, %v800_v13 }
0x10d4   :  { %1166 = vpow2.f32 %v987_v14 }
0x10e1   :  { %v1167_v15 = vpop.eup %1166 }
0x10e2   :  { %v804_v16 = vadd.f32 1.0, %v1167_v15 }
0x10e4   :  { %1168 = vrcp.f32 %v804_v16 }
0x10f1   :  { %v1169_v17 = vpop.eup %1168 }
0x10f2   :  { %v819_v23 = vsub.f32 1.0, %v1169_v17  ;;  %v825_v25 = vmul.f32 %v1169_v17, %v719_v4 }
0x1144   :  { %v810_v18 = vpop.permute.xlu0 %809 }
0x1145   :  { %v812_v19 = vmul.f32 %v1169_v17, %v810_v18 }
0x1147   :  { %814 = vrot.lane.b32.xlu1 %v812_v19, %s1293_s9 }
0x11b9   :  { %v815_v20 = vpop.permute.xlu1 %814 }
0x11ba   :  { %v817_v21 = vadd.f32 %v815_v20, %v727_v12 }
0x11bc   :  { %1170 = vtanh.f32 %v817_v21 }
0x11c9   :  { %v1171_v22 = vpop.eup %1170 }
0x11ca   :  { %821 = vrot.lane.b32.xlu0 %v1171_v22, %s1295_s10 }
0x123c   :  { %v822_v24 = vpop.permute.xlu0 %821 }
0x123d   :  { %v824_v26 = vmul.f32 %v822_v24, %v819_v23 }
0x123f   :  { %v826_v27 = vadd.f32 %v825_v25, %v824_v26 }
0x1241   :  { %828 = vrot.lane.b32.xlu1 %v826_v27, %s1295_s10 }
0x12b3   :  { %v829_v28 = vpop.permute.xlu1 %828 }
0x12b4   :  { %832 = vst.msk [vmem:[#allocation8 + $0x30] sm:$0xff] %vm65_vm1, %v829_v28  ;;  %1116 = vmatmul.mubr.msk.f32.vlgmr.msra.gmra.mxu1 %vm65_vm1, %v829_v28 }
0x1374   :  { %v903_v29 = vpop.f32.mrf.mxu1 }
0x1375   :  { %v914_v30 = vadd.f32 %v903_v29, %v1389_v8  ;;  %v907_v33 = vadd.f32 %v903_v29, %v834_v32 }
0x1376   :  { %v1117_v31 = vpop.f32.mrf.mxu1 }
0x1377   :  { %916 = vrot.lane.b32.xlu0 %v914_v30, %s1293_s9  ;;  %v989_v34 = vmul.f32 -1.442695, %v907_v33 }
0x1379   :  { %1172 = vpow2.f32 %v989_v34 }
0x1386   :  { %v1173_v35 = vpop.eup %1172 }
0x1387   :  { %v911_v36 = vadd.f32 1.0, %v1173_v35 }
0x1389   :  { %1174 = vrcp.f32 %v911_v36 }
0x1396   :  { %v1175_v37 = vpop.eup %1174 }
0x1397   :  { %v926_v8 = vsub.f32 1.0, %v1175_v37  ;;  %v932_v44 = vmul.f32 %v1175_v37, %v826_v27 }
0x13e9   :  { %v917_v38 = vpop.permute.xlu0 %916 }
0x13ea   :  { %v919_v39 = vmul.f32 %v1175_v37, %v917_v38 }
0x13ec   :  { %921 = vrot.lane.b32.xlu1 %v919_v39, %s1293_s9 }
0x145e   :  { %v922_v40 = vpop.permute.xlu1 %921 }
0x145f   :  { %v924_v41 = vadd.f32 %v922_v40, %v834_v32 }
0x1461   :  { %1176 = vtanh.f32 %v924_v41 }
0x146e   :  { %v1177_v42 = vpop.eup %1176 }
0x146f   :  { %928 = vrot.lane.b32.xlu0 %v1177_v42, %s1295_s10 }
0x14e1   :  { %v929_v43 = vpop.permute.xlu0 %928 }
0x14e2   :  { %v931_v45 = vmul.f32 %v929_v43, %v926_v8 }
0x14e4   :  { %v933_v46 = vadd.f32 %v932_v44, %v931_v45 }
0x14e6   :  { %935 = vrot.lane.b32.xlu1 %v933_v46, %s1295_s10 }
0x1558   :  { %v936_v47 = vpop.permute.xlu1 %935 }
0x1559   :  { %939 = vst.msk [vmem:[#allocation8 + $0x38] sm:$0xff] %vm65_vm1, %v936_v47  ;;  %940 = vst.msk [vmem:[#allocation9] sm:$0xff] %vm65_vm1, %v936_v47 }
0x155a   :  { %1249 = shalt.err (!%p1246_p5)
}
0x155b   :  { %952 = dma.vmem_to_hbm [thread:$0]  %s947_s12, 1024, %s1508_s4, [#allocation4], %s1287_s21, %s1287_s21, %s1288_s22  }
0x155c   :  { %s1258_s18 = scalar_lea.vmem %s960_s14, 128  ;;  %p1263_p7 = scmp.lt.s32.totalorder %s960_s14, %s960_s14 }
0x155d   :  { %p1259_p6 = scmp.ne.s32.totalorder %s960_s14, %s1258_s18  ;;  %p1264_p8 = scmp.lt.s32.totalorder %s1258_s18, %s1258_s18 }
0x155f   :  { %p1265_p9 = por %p1264_p8, %p1263_p7 }
0x1561   :  { %p1266_p10 = pnand %p1265_p9, %p1259_p6 }
0x1563   :  { %1269 = shalt.err (!%p1266_p10)
}
0x1564   :  { %962 = dma.vmem_to_hbm [thread:$0]  %s960_s14, 128, %s1509_s5, [#allocation10]  }
0x1565   :  { %1282 = dma.done.wait [#allocation4], 1024  }
0x1566   :  { %1283 = vsyncadd [#allocation4], 4294966272 }
0x1567   :  { %1284 = dma.done.wait [#allocation10], 128  }
0x1568   :  { %1285 = vsyncadd [#allocation10], 4294967168 }
0x1569   :  { %969 = vsyncpa [#allocation3], 1 }
0x156a   :  { %970 = vsyncpa [#allocation6], 1 }
0x156b   :  { %971 = vsyncpa [#allocation4], 1 }
0x156c   :  { %972 = vsyncpa [#allocation10], 1 }

</bundles_post_ra>
